<compile_context>
chip_gen: v7x
topology: tpu7x:2x2x1
jax: 0.10.0
libtpu: 0.0.40
codegen_flags: <defaults>
</compile_context>

<pallas_src>
import jax
import jax.numpy as jnp
from jax import lax
from jax.experimental import pallas as pl
from jax.experimental.pallas import tpu as pltpu


# ---------------------------------------------------------------------------
# VMEM sizing helpers
# ---------------------------------------------------------------------------
def _vmem_capacity_bytes():
    try:
        return int(pltpu.get_tpu_info().vmem_capacity_bytes)
    except Exception:
        return 64 * 1024 * 1024        # conservative (v7x-sized) fallback


def _pick_row_tile(ho, batch, bytes_per_rowpair, budget):
    """Output rows per tile: as large as the VMEM budget allows, sublane-
    aligned when tiling, and split so batch * n_tiles >= 2 (v7x dual-TC)."""
    th = max(1, min(ho, budget // max(bytes_per_rowpair, 1)))
    if batch * (-(-ho // th)) < 2 and ho >= 16:
        th = ho // 2                    # give the second TensorCore work
    if th < ho:
        th = min(ho, max(8, (th // 8) * 8))   # keep output block aligned
    return th


# ---------------------------------------------------------------------------
# Pallas kernels
# ---------------------------------------------------------------------------
def _conv3x3_s2_kernel(xm_ref, xh_ref, w_ref, b_ref, o_ref):
    # xm_ref: (1, th, 2, Wo, 2C) row-pair / column-pair packed input tile
    #         axis1: output row (row pair), axis2: row parity,
    #         axis3: column pair, axis4: (col parity, channel).
    # xh_ref: (1, 1, 1, Wo, 2C)  odd row of pair (i*th - 1): kh=0 tap of the
    #                            tile's first output row (zeroed when i == 0).
    # w_ref : (3, 2C, 2C)        packed weights: out cols [0:C] hit this column
    #                            pair, [C:2C] hit the next one (kw=0 taps).
    # b_ref : (1, C)
    # o_ref : (1, th, Wo*C)      lane-dense output tile.
    i = pl.program_id(1)
    _, th, _, wo, c2 = xm_ref.shape
    c = c2 // 2
    m = th * wo

    even = xm_ref[0, :, 0, :, :]                 # rows 2*ho      (kh=1)
    odd = xm_ref[0, :, 1, :, :]                  # rows 2*ho + 1  (kh=2, kh=0)
    halo = xh_ref[0, 0, 0]                       # row 2*r0 - 1
    halo = jnp.where(i == 0, jnp.zeros_like(halo), halo)   # top zero-pad

    p1 = jnp.dot(even.reshape(m, c2), w_ref[1],
                 preferred_element_type=jnp.float32)
    p2 = jnp.dot(odd.reshape(m, c2), w_ref[2],
                 preferred_element_type=jnp.float32)
    p0 = jnp.dot(odd.reshape(m, c2), w_ref[0],
                 preferred_element_type=jnp.float32)        # -> next out row
    ph = jnp.dot(halo, w_ref[0],
                 preferred_element_type=jnp.float32)        # (Wo, 2C)

    r = (p1 + p2).reshape(th, wo, c2)
    p0r = p0.reshape(th, wo, c2)
    if th > 1:
        prev = jnp.concatenate([ph[None], p0r[: th - 1]], axis=0)
    else:
        prev = ph[None]
    r = r + prev                                 # (th, Wo, 2C)

    main = r[..., :c]                            # contributions to col pair wo
    nxt = r[..., c:]                             # contributions to pair wo + 1
    if wo > 1:
        shifted = jnp.concatenate(
            [jnp.zeros((th, 1, c), jnp.float32), nxt[:, : wo - 1, :]], axis=1)
    else:
        shifted = jnp.zeros((th, 1, c), jnp.float32)

    acc = main + shifted + b_ref[...]            # (1, C) broadcasts
    o_ref[0] = acc.reshape(th, wo * c).astype(o_ref.dtype)


def _avgpool2x2_kernel(x_ref, o_ref):
    # x_ref: (1, th, 2, Wo, 2C)   o_ref: (1, th, Wo*C)
    _, th, _, wo, c2 = x_ref.shape
    c = c2 // 2
    top = x_ref[0, :, 0, :, :].astype(jnp.float32)
    bot = x_ref[0, :, 1, :, :].astype(jnp.float32)
    s = (top[..., :c] + top[..., c:] + bot[..., :c] + bot[..., c:]) * 0.25
    o_ref[0] = s.reshape(th, wo * c).astype(o_ref.dtype)


# ---------------------------------------------------------------------------
# NHWC entry points (no extra HBM passes for even H/W)
# ---------------------------------------------------------------------------
def downsample_conv2d_nhwc(x, w_packed, bias):
    """3x3 conv, stride 2, pad 1, Cin == Cout == C.  NHWC in/out."""
    B, H, W, C = x.shape
    Ho, Wo = (H + 1) // 2, (W + 1) // 2
    if (H % 2) or (W % 2):
        x = jnp.pad(x, ((0, 0), (0, H % 2), (0, W % 2), (0, 0)))
    xpk = x.reshape(B, Ho, 2, Wo, 2 * C)         # metadata-only packing

    vmem_cap = _vmem_capacity_bytes()
    itemsize = jnp.dtype(x.dtype).itemsize
    th = _pick_row_tile(Ho, B, 4 * Wo * C * itemsize, vmem_cap // 8)
    n_tiles = pl.cdiv(Ho, th)

    out = pl.pallas_call(
        _conv3x3_s2_kernel,
        out_shape=jax.ShapeDtypeStruct((B, Ho, Wo * C), x.dtype),
        grid=(B, n_tiles),
        in_specs=[
            pl.BlockSpec((1, th, 2, Wo, 2 * C), lambda b, i: (b, i, 0, 0, 0)),
            pl.BlockSpec((1, 1, 1, Wo, 2 * C),
                         lambda b, i: (b, jnp.maximum(i * th - 1, 0), 1, 0, 0)),
            pl.BlockSpec((3, 2 * C, 2 * C), lambda b, i: (0, 0, 0)),
            pl.BlockSpec((1, C), lambda b, i: (0, 0)),
        ],
        out_specs=pl.BlockSpec((1, th, Wo * C), lambda b, i: (b, i, 0)),
        compiler_params=pltpu.CompilerParams(
            dimension_semantics=("parallel", "parallel"),
            vmem_limit_bytes=(vmem_cap * 3) // 4),
    )(xpk, xpk, w_packed, bias.reshape(1, C).astype(jnp.float32))

    return out.reshape(B, Ho, Wo, C)


def downsample_avgpool2d_nhwc(x):
    """AvgPool2d(kernel=2, stride=2).  NHWC in/out."""
    B, H, W, C = x.shape
    Ho, Wo = H // 2, W // 2
    x = x[:, : 2 * Ho, : 2 * Wo, :]              # floor behavior (no-op if even)
    xpk = x.reshape(B, Ho, 2, Wo, 2 * C)

    vmem_cap = _vmem_capacity_bytes()
    itemsize = jnp.dtype(x.dtype).itemsize
    th = _pick_row_tile(Ho, B, 4 * Wo * C * itemsize, vmem_cap // 8)
    n_tiles = pl.cdiv(Ho, th)

    out = pl.pallas_call(
        _avgpool2x2_kernel,
        out_shape=jax.ShapeDtypeStruct((B, Ho, Wo * C), x.dtype),
        grid=(B, n_tiles),
        in_specs=[pl.BlockSpec((1, th, 2, Wo, 2 * C),
                               lambda b, i: (b, i, 0, 0, 0))],
        out_specs=pl.BlockSpec((1, th, Wo * C), lambda b, i: (b, i, 0)),
        compiler_params=pltpu.CompilerParams(
            dimension_semantics=("parallel", "parallel"),
            vmem_limit_bytes=(vmem_cap * 3) // 4),
    )(xpk)

    return out.reshape(B, Ho, Wo, C)


# ---------------------------------------------------------------------------
# NCHW entry points (PyTorch layout parity)
# ---------------------------------------------------------------------------
@jax.jit
def downsample_conv2d(x_nchw, w_packed, bias):
    # TODO(synk): in an NHWC-native model call downsample_conv2d_nhwc directly
    # and skip both transposes (they are the main residual HBM cost here).
    x = jnp.transpose(x_nchw, (0, 2, 3, 1))
    y = downsample_conv2d_nhwc(x, w_packed, bias)
    return jnp.transpose(y, (0, 3, 1, 2))


@jax.jit
def downsample_avgpool2d(x_nchw):
    x = jnp.transpose(x_nchw, (0, 2, 3, 1))
    y = downsample_avgpool2d_nhwc(x)
    return jnp.transpose(y, (0, 3, 1, 2))


class Downsample:
    """JAX/Pallas port of the PyTorch Downsample module (dims=2 supported)."""

    def __init__(self, channels, use_conv, dims=2, key=None):
        assert dims == 2, "This Pallas port implements dims=2."
        self.channels = channels
        self.use_conv = use_conv
        if use_conv:
            key = jax.random.PRNGKey(0) if key is None else key
            kw_key, kb_key = jax.random.split(key)
            fan_in = channels * 9
            bound = 1.0 / float(fan_in) ** 0.5
            self.weight = jax.random.uniform(
                kw_key, (channels, channels, 3, 3), jnp.float32, -bound, bound)
            self.bias = jax.random.uniform(
                kb_key, (channels,), jnp.float32, -bound, bound)
            # Packed weight (kh, 2C, 2C):
            #   rows   [0:C] = even column (col 2*wo), rows [C:2C] = odd column
            #   cols   [0:C] = contribution to this output column,
            #   cols [C:2C]  = contribution to the NEXT output column (kw=0).
            wt = jnp.transpose(self.weight, (2, 3, 1, 0))    # (kh, kw, cin, cout)
            wp = jnp.zeros((3, 2 * channels, 2 * channels), jnp.float32)
            wp = wp.at[:, :channels, :channels].set(wt[:, 1])   # kw=1
            wp = wp.at[:, channels:, :channels].set(wt[:, 2])   # kw=2
            wp = wp.at[:, channels:, channels:].set(wt[:, 0])   # kw=0 (shift)
            self.w_packed = wp

    def __call__(self, x_nchw):
        assert x_nchw.shape[1] == self.channels
        if self.use_conv:
            return downsample_conv2d(x_nchw, self.w_packed, self.bias)
        return downsample_avgpool2d(x_nchw)


# ---------------------------------------------------------------------------
# Pure-JAX references for correctness checking
# ---------------------------------------------------------------------------
def _ref_conv(x, w, b):
    y = lax.conv_general_dilated(
        x, w, window_strides=(2, 2), padding=((1, 1), (1, 1)),
        dimension_numbers=("NCHW", "OIHW", "NCHW"))
    return y + b[None, :, None, None]


def _ref_avgpool(x):
    B, C, H, W = x.shape
    Ho, Wo = H // 2, W // 2
    xc = x[:, :, : 2 * Ho, : 2 * Wo]
    return xc.reshape(B, C, Ho, 2, Wo, 2).mean(axis=(3, 5))


if __name__ == "__main__":
    key = jax.random.PRNGKey(0)
    kx, kp, kx2 = jax.random.split(key, 3)
    B, C, H, W = 2, 4, 16, 16
    x = jax.random.normal(kx, (B, C, H, W), jnp.float32)

    # use_conv=True path
    ds_conv = Downsample(C, use_conv=True, dims=2, key=kp)
    y_conv = jax.block_until_ready(ds_conv(x))
    y_conv_ref = _ref_conv(x, ds_conv.weight, ds_conv.bias)
    assert y_conv.shape == (B, C, H // 2, W // 2)
    assert jnp.allclose(y_conv, y_conv_ref, atol=1e-3, rtol=1e-3)

    # use_conv=False path (AvgPool2d(2))
    ds_pool = Downsample(C, use_conv=False, dims=2)
    y_pool = jax.block_until_ready(ds_pool(x))
    assert y_pool.shape == (B, C, H // 2, W // 2)
    assert jnp.allclose(y_pool, _ref_avgpool(x), atol=1e-4, rtol=1e-4)

    # odd spatial extents (exercises wrapper halo padding / floor pooling)
    xo = jax.random.normal(kx2, (B, C, 15, 15), jnp.float32)
    y_conv_o = jax.block_until_ready(ds_conv(xo))
    assert y_conv_o.shape == (B, C, 8, 8)
    assert jnp.allclose(y_conv_o, _ref_conv(xo, ds_conv.weight, ds_conv.bias),
                        atol=1e-3, rtol=1e-3)
    y_pool_o = jax.block_until_ready(ds_pool(xo))
    assert y_pool_o.shape == (B, C, 7, 7)
    assert jnp.allclose(y_pool_o, _ref_avgpool(xo), atol=1e-4, rtol=1e-4)

    print("KERNEL_OK")
</pallas_src>

<mosaic_0001>
module attributes {stable_mosaic.version = 11 : i64} {
  func.func @_conv3x3_s2_kernel(%arg0: i32, %arg1: i32, %arg2: memref<1x8x2x8x8xf32, #tpu.memory_space<vmem>>, %arg3: memref<1x1x1x8x8xf32, #tpu.memory_space<vmem>>, %arg4: memref<3x8x8xf32, #tpu.memory_space<vmem>>, %arg5: memref<1x4xf32, #tpu.memory_space<vmem>>, %arg6: memref<1x8x32xf32, #tpu.memory_space<vmem>>) attributes {dimension_semantics = [#tpu.dimension_semantics<parallel>, #tpu.dimension_semantics<parallel>], iteration_bounds = array<i64: 2, 1>, scalar_prefetch = 0 : i64, scratch_operands = 0 : i64, tpu.core_type = #tpu.core_type<tc>, window_params = [{transform_indices = @transform_0, window_bounds = array<i64: 1, 8, 2, 8, 8>}, {transform_indices = @transform_1, window_bounds = array<i64: 1, 1, 1, 8, 8>}, {pipeline_mode = #tpu.pipeline_mode<synchronous>, transform_indices = @transform_2, window_bounds = array<i64: 3, 8, 8>}, {pipeline_mode = #tpu.pipeline_mode<synchronous>, transform_indices = @transform_3, window_bounds = array<i64: 1, 4>}, {transform_indices = @transform_4, window_bounds = array<i64: 1, 8, 32>}]} {
    %c0 = arith.constant 0 : index
    %c0_0 = arith.constant 0 : index
    %c0_1 = arith.constant 0 : index
    %c0_2 = arith.constant 0 : index
    %c0_3 = arith.constant 0 : index
    %0 = vector.load %arg2[%c0, %c0_0, %c0_1, %c0_2, %c0_3] : memref<1x8x2x8x8xf32, #tpu.memory_space<vmem>>, vector<1x8x1x8x8xf32>
    %1 = vector.shape_cast %0 : vector<1x8x1x8x8xf32> to vector<8x8x8xf32>
    %c0_4 = arith.constant 0 : index
    %c0_5 = arith.constant 0 : index
    %c1 = arith.constant 1 : index
    %c0_6 = arith.constant 0 : index
    %c0_7 = arith.constant 0 : index
    %2 = vector.load %arg2[%c0_4, %c0_5, %c1, %c0_6, %c0_7] : memref<1x8x2x8x8xf32, #tpu.memory_space<vmem>>, vector<1x8x1x8x8xf32>
    %3 = vector.shape_cast %2 : vector<1x8x1x8x8xf32> to vector<8x8x8xf32>
    %c0_8 = arith.constant 0 : index
    %c0_9 = arith.constant 0 : index
    %c0_10 = arith.constant 0 : index
    %c0_11 = arith.constant 0 : index
    %c0_12 = arith.constant 0 : index
    %4 = vector.load %arg3[%c0_8, %c0_9, %c0_10, %c0_11, %c0_12] : memref<1x1x1x8x8xf32, #tpu.memory_space<vmem>>, vector<1x1x1x8x8xf32>
    %5 = vector.shape_cast %4 : vector<1x1x1x8x8xf32> to vector<8x8xf32>
    %c0_i32 = arith.constant 0 : i32
    %6 = arith.cmpi eq, %arg1, %c0_i32 : i32
    %cst = arith.constant 0.000000e+00 : f32
    %7 = vector.broadcast %cst : f32 to vector<8x8xf32>
    %8 = arith.select %6, %7, %5 : vector<8x8xf32>
    %9 = vector.shape_cast %1 : vector<8x8x8xf32> to vector<64x8xf32>
    %c1_13 = arith.constant 1 : index
    %c0_14 = arith.constant 0 : index
    %c0_15 = arith.constant 0 : index
    %10 = vector.load %arg4[%c1_13, %c0_14, %c0_15] : memref<3x8x8xf32, #tpu.memory_space<vmem>>, vector<1x8x8xf32>
    %11 = vector.shape_cast %10 : vector<1x8x8xf32> to vector<8x8xf32>
    %cst_16 = arith.constant dense<0.000000e+00> : vector<64x8xf32>
    %12 = tpu.matmul %9, %11, %cst_16 {dimension_numbers = #tpu.dot_dimension_numbers<[1], [0], [0], [1], [0, 0, 1, 1], [], []>} : vector<64x8xf32>, vector<8x8xf32>, vector<64x8xf32> -> vector<64x8xf32>
    %13 = vector.shape_cast %3 : vector<8x8x8xf32> to vector<64x8xf32>
    %c2 = arith.constant 2 : index
    %c0_17 = arith.constant 0 : index
    %c0_18 = arith.constant 0 : index
    %14 = vector.load %arg4[%c2, %c0_17, %c0_18] : memref<3x8x8xf32, #tpu.memory_space<vmem>>, vector<1x8x8xf32>
    %15 = vector.shape_cast %14 : vector<1x8x8xf32> to vector<8x8xf32>
    %cst_19 = arith.constant dense<0.000000e+00> : vector<64x8xf32>
    %16 = tpu.matmul %13, %15, %cst_19 {dimension_numbers = #tpu.dot_dimension_numbers<[1], [0], [0], [1], [0, 0, 1, 1], [], []>} : vector<64x8xf32>, vector<8x8xf32>, vector<64x8xf32> -> vector<64x8xf32>
    %17 = vector.shape_cast %3 : vector<8x8x8xf32> to vector<64x8xf32>
    %c0_20 = arith.constant 0 : index
    %c0_21 = arith.constant 0 : index
    %c0_22 = arith.constant 0 : index
    %18 = vector.load %arg4[%c0_20, %c0_21, %c0_22] : memref<3x8x8xf32, #tpu.memory_space<vmem>>, vector<1x8x8xf32>
    %19 = vector.shape_cast %18 : vector<1x8x8xf32> to vector<8x8xf32>
    %cst_23 = arith.constant dense<0.000000e+00> : vector<64x8xf32>
    %20 = tpu.matmul %17, %19, %cst_23 {dimension_numbers = #tpu.dot_dimension_numbers<[1], [0], [0], [1], [0, 0, 1, 1], [], []>} : vector<64x8xf32>, vector<8x8xf32>, vector<64x8xf32> -> vector<64x8xf32>
    %c0_24 = arith.constant 0 : index
    %c0_25 = arith.constant 0 : index
    %c0_26 = arith.constant 0 : index
    %21 = vector.load %arg4[%c0_24, %c0_25, %c0_26] : memref<3x8x8xf32, #tpu.memory_space<vmem>>, vector<1x8x8xf32>
    %22 = vector.shape_cast %21 : vector<1x8x8xf32> to vector<8x8xf32>
    %cst_27 = arith.constant dense<0.000000e+00> : vector<8x8xf32>
    %23 = tpu.matmul %8, %22, %cst_27 {dimension_numbers = #tpu.dot_dimension_numbers<[1], [0], [0], [1], [0, 0, 1, 1], [], []>} : vector<8x8xf32>, vector<8x8xf32>, vector<8x8xf32> -> vector<8x8xf32>
    %24 = arith.addf %12, %16 : vector<64x8xf32>
    %25 = vector.shape_cast %24 : vector<64x8xf32> to vector<8x8x8xf32>
    %26 = vector.shape_cast %20 : vector<64x8xf32> to vector<8x8x8xf32>
    %27 = vector.shape_cast %23 : vector<8x8xf32> to vector<1x8x8xf32>
    %28 = vector.extract_strided_slice %26 {offsets = [0, 0, 0], sizes = [7, 8, 8], strides = [1, 1, 1]} : vector<8x8x8xf32> to vector<7x8x8xf32>
    %29 = tpu.concatenate %27, %28 in 0 : vector<1x8x8xf32>, vector<7x8x8xf32> -> vector<8x8x8xf32>
    %30 = arith.addf %25, %29 : vector<8x8x8xf32>
    %31 = vector.extract_strided_slice %30 {offsets = [0, 0, 0], sizes = [8, 8, 4], strides = [1, 1, 1]} : vector<8x8x8xf32> to vector<8x8x4xf32>
    %32 = vector.extract_strided_slice %30 {offsets = [0, 0, 4], sizes = [8, 8, 4], strides = [1, 1, 1]} : vector<8x8x8xf32> to vector<8x8x4xf32>
    %cst_28 = arith.constant 0.000000e+00 : f32
    %33 = vector.broadcast %cst_28 : f32 to vector<8x1x4xf32>
    %34 = vector.extract_strided_slice %32 {offsets = [0, 0, 0], sizes = [8, 7, 4], strides = [1, 1, 1]} : vector<8x8x4xf32> to vector<8x7x4xf32>
    %35 = tpu.concatenate %33, %34 in 1 : vector<8x1x4xf32>, vector<8x7x4xf32> -> vector<8x8x4xf32>
    %36 = arith.addf %31, %35 : vector<8x8x4xf32>
    %c0_29 = arith.constant 0 : index
    %c0_30 = arith.constant 0 : index
    %37 = vector.load %arg5[%c0_29, %c0_30] : memref<1x4xf32, #tpu.memory_space<vmem>>, vector<1x4xf32>
    %38 = vector.shape_cast %37 : vector<1x4xf32> to vector<1x1x4xf32>
    %39 = vector.broadcast %38 : vector<1x1x4xf32> to vector<8x8x4xf32>
    %40 = arith.addf %36, %39 : vector<8x8x4xf32>
    %41 = vector.shape_cast %40 : vector<8x8x4xf32> to vector<8x32xf32>
    %c0_31 = arith.constant 0 : index
    %c0_32 = arith.constant 0 : index
    %c0_33 = arith.constant 0 : index
    %42 = vector.load %arg6[%c0_31, %c0_32, %c0_33] : memref<1x8x32xf32, #tpu.memory_space<vmem>>, vector<1x8x32xf32>
    %43 = vector.shape_cast %42 : vector<1x8x32xf32> to vector<8x32xf32>
    %44 = vector.shape_cast %41 : vector<8x32xf32> to vector<1x8x32xf32>
    tpu.vector_store %arg6[%c0_31, %c0_32, %c0_33], %44 {strides = array<i32>} : memref<1x8x32xf32, #tpu.memory_space<vmem>>, vector<1x8x32xf32>,
    return
  }
  func.func @transform_0(%arg0: i32, %arg1: i32) -> (i32, i32, i32, i32, i32) {
    %c0_i32 = arith.constant 0 : i32
    %c0_i32_0 = arith.constant 0 : i32
    %c0_i32_1 = arith.constant 0 : i32
    %c0_i32_2 = arith.constant 0 : i32
    return %arg0, %arg1, %c0_i32, %c0_i32_0, %c0_i32_1 : i32, i32, i32, i32, i32
  }
  func.func @transform_1(%arg0: i32, %arg1: i32) -> (i32, i32, i32, i32, i32) {
    %c8_i32 = arith.constant 8 : i32
    %0 = arith.muli %arg1, %c8_i32 : i32
    %c1_i32 = arith.constant 1 : i32
    %1 = arith.subi %0, %c1_i32 : i32
    %c0_i32 = arith.constant 0 : i32
    %2 = arith.maxsi %1, %c0_i32 : i32
    %c1_i32_0 = arith.constant 1 : i32
    %c0_i32_1 = arith.constant 0 : i32
    %c0_i32_2 = arith.constant 0 : i32
    %c0_i32_3 = arith.constant 0 : i32
    return %arg0, %2, %c1_i32_0, %c0_i32_1, %c0_i32_2 : i32, i32, i32, i32, i32
  }
  func.func @transform_2(%arg0: i32, %arg1: i32) -> (i32, i32, i32) {
    %c0_i32 = arith.constant 0 : i32
    %c0_i32_0 = arith.constant 0 : i32
    %c0_i32_1 = arith.constant 0 : i32
    %c0_i32_2 = arith.constant 0 : i32
    return %c0_i32, %c0_i32_0, %c0_i32_1 : i32, i32, i32
  }
  func.func @transform_3(%arg0: i32, %arg1: i32) -> (i32, i32) {
    %c0_i32 = arith.constant 0 : i32
    %c0_i32_0 = arith.constant 0 : i32
    %c0_i32_1 = arith.constant 0 : i32
    return %c0_i32, %c0_i32_0 : i32, i32
  }
  func.func @transform_4(%arg0: i32, %arg1: i32) -> (i32, i32, i32) {
    %c0_i32 = arith.constant 0 : i32
    %c0_i32_0 = arith.constant 0 : i32
    return %arg0, %arg1, %c0_i32 : i32, i32, i32
  }
}

</mosaic_0001>

<bundles_post_ra>
// kernel: downsample_conv2d.1
= control target key start
LH: loop header
LB: loop body
LE: loop exit
PB: predicated region body
PF: predicated region fallthrough
CT: control target
= control target key end

     0   :  { %s1360_s15 = smov 0   ;;  %s1362_s16 = smov 0   ;;  %s1468_s0 = inlined_call_operand.vmem [shape: f32[2,8,2,8,8], index: 0, kind: input, shape index: {}, may-alias: {0,1}]   ;;  %s1469_s1 = inlined_call_operand.vmem [shape: f32[2,8,2,8,8], index: 1, kind: input, shape index: {}, may-alias: {0,1}]   ;;  %s1470_s2 = inlined_call_operand.vmem [shape: f32[3,8,8], index: 2, kind: input, shape index: {}]   ;;  %s1471_s3 = inlined_call_operand.vmem [shape: f32[1,4], index: 3, kind: input, shape index: {}]   ;;  %s1472_s4 = inlined_call_operand.vmem [shape: f32[2,8,32], index: 4, kind: output, shape index: {}]  }
   0x1   :  { %s1364_s17 = smov 0  }
   0x2 LB: > { %s26_s1 = sadd.s32 1, %s1317_s16  ;;  %p1131_p0 = scmp.ge.s32.totalorder %s1321_s17, 1  ;;  %s1321_s17 = sphi %s1364_s17, %s14_s17   ;;  %s1317_s16 = sphi %s1362_s16, %s1474_s16   ;;  %s1313_s15 = sphi %s1360_s15, %s1473_s15  }
   0x3   : > { %p28_p1 = scmp.ge.s32.totalorder %s26_s1, 2  ;;  %p217_p2 = scmp.lt.s32.totalorder %s1321_s17, 3 }
   0x5   : > { %s1476_s1 = smov (%p28_p1, %s26_s1), 0  ;;  %p218_p3 = pnand %p1131_p0, %p217_p2 }
   0x6   : > { %v1147_v0 = vld [vmem:[%s1470_s2 + $0x10] sm:$0xff] (!%p218_p3)  ;;  %p265_p4 = scmp.lt.s32.totalorder (!%p218_p3), %s1313_s15, 1  ;;  %v457_v1 = vld [vmem:[%s1470_s2] sm:$0xff] (!%p218_p3)  ;;  %v1323_v2 = vmov (!%p218_p3), 0.0   ;;  %vm327_vm0 = vcmask (!%p218_p3), 64512   ;;  %v1146_v8 = vld [vmem:[%s1470_s2 + $0x8] sm:$0xff] (!%p218_p3) }
   0x7   : > { %221 = sbr.rel (%p218_p3) target bundleno = 521 (0x209), region = 36  ;;  %1206 = vmatprep.subr.mxu0 (!%p218_p3), %v1147_v0  ;;  %1253 = vmatprep.subr.mxu1 (!%p218_p3), %v1147_v0  ;;  %vm1324_vm1 = vmmov (!%p218_p3), 0   ;;  %s1325_s28 = smov (!%p218_p3), 124   ;;  %vm812_vm2 = vcmask (!%p218_p3), 1040384   ;;  %vm1008_vm3 = vcmask (!%p218_p3), 31744   ;;  %vm1011_vm4 = vcmask (!%p218_p3), 97280  }
   0x8   : > { %1207 = vmatpush3.msra.mxu0 (!%p218_p3), %v1147_v0  ;;  %1254 = vmatpush3.msra.mxu1 (!%p218_p3), %v1147_v0  ;;  %s1328_s5 = smov (!%p218_p3), 8   ;;  %s1329_s6 = smov (!%p218_p3), 4   ;;  %vm1013_vm5 = vcmask (!%p218_p3), 130048   ;;  %vm1015_vm6 = vcmask (!%p218_p3), 162816   ;;  %vm1017_vm7 = vcmask (!%p218_p3), 195584   ;;  %vm1019_vm8 = vcmask (!%p218_p3), 228352  }
   0x9   : > { %1234 = vmatprep.subr.mxu0 (!%p218_p3), %v1323_v2  ;;  %1220 = vmatprep.subr.mxu1 (!%p218_p3), %v457_v1  ;;  %s1330_s7 = smov (!%p218_p3), 16   ;;  %s1331_s8 = smov (!%p218_p3), 12   ;;  %vm1021_vm9 = vcmask (!%p218_p3), 261120  }
   0xa   : > { %s1332_s9 = smov (!%p218_p3), 24   ;;  %s1333_s10 = smov (!%p218_p3), 20  }
   0xb   : > { %s1334_s11 = smov (!%p218_p3), 28  }
   0xe   : > { %s1478_s15 = smov (!%p265_p4, %s1313_s15), 1 }
   0xf   : > { %s1175_s22 = sshll.u32 %s1478_s15, 7  ;;  %s1136_s12 = sshll.u32 %s1478_s15, 3 }
  0x10   : > { %s1390_s25 = scalar_lea.vmem %s1468_s0, %s1175_s22  ;;  %s299_s18 = scalar_lea.vmem %s1472_s4, %s1136_s12 }
  0x11   : > { %v1137_v3 = vld [vmem:[%s1390_s25 + $0x8] sm:$0xff]  ;;  %v1138_v5 = vld [vmem:[%s1390_s25 + $0x18] sm:$0xff]  ;;  %v300_v11 = vld [vmem:[%s1390_s25] sm:$0xff] }
  0x12   : > { %v1139_v4 = vld [vmem:[%s1390_s25 + $0x28] sm:$0xff]  ;;  %1208 = vmatprep.mubr.msk.f32.mxu0 %vm327_vm0, %v1137_v3  ;;  %v1140_v6 = vld [vmem:[%s1390_s25 + $0x38] sm:$0xff]  ;;  %v301_v13 = vld [vmem:[%s1390_s25 + $0x10] sm:$0xff] }
  0x13   : > { %1211 = vmatprep.mubr.msk.f32.mxu1 %vm327_vm0, %v1139_v4  ;;  %v1141_v7 = vld [vmem:[%s1390_s25 + $0x48] sm:$0xff]  ;;  %1209 = vmatmul.mubr.msk.f32.vlgmr.msra.gmra.mrb[0].mxu0 %vm327_vm0, %v1138_v5  ;;  %v1142_v9 = vld [vmem:[%s1390_s25 + $0x58] sm:$0xff]  ;;  %v302_v14 = vld [vmem:[%s1390_s25 + $0x20] sm:$0xff] }
  0x14   : > { %1212 = vmatmul.mubr.msk.f32.vlgmr.msra.gmra.mrb[0].mxu1 %vm327_vm0, %v1140_v6  ;;  %1235 = vmatpush3.msra.mxu0 %v457_v1  ;;  %v1143_v10 = vld [vmem:[%s1390_s25 + $0x68] sm:$0xff]  ;;  %v1144_v12 = vld [vmem:[%s1390_s25 + $0x78] sm:$0xff]  ;;  %v303_v15 = vld [vmem:[%s1390_s25 + $0x30] sm:$0xff] }
  0x15   : > { %1221 = vmatpush3.msra.mxu1 %v457_v1  ;;  %1214 = vmatprep.mubr.msk.f32.mxu1 %vm327_vm0, %v1141_v7  ;;  %v304_v16 = vld [vmem:[%s1390_s25 + $0x40] sm:$0xff]  ;;  %v305_v17 = vld [vmem:[%s1390_s25 + $0x50] sm:$0xff] }
  0x16   : > { %1236 = vmatprep.mubr.msk.f32.mxu0 %vm1324_vm1, %v1323_v2  ;;  %1239 = vmatprep.subr.mxu0 %v1146_v8  ;;  %v306_v18 = vld [vmem:[%s1390_s25 + $0x60] sm:$0xff]  ;;  %v307_v19 = vld [vmem:[%s1390_s25 + $0x70] sm:$0xff] }
  0x17   : > { %1237 = vmatmul.mubr.f32.vlgmr.msra.gmra.mrb[2].mxu0 %v1323_v2 }
  0x18   : > { %1215 = vmatmul.mubr.msk.f32.gmra.mrb[2].mxu1 %vm327_vm0, %v1142_v9  ;;  %1240 = vmatpush3.msra.mxu0 %v1146_v8  ;;  %v1326_v8 = vmov 1983009808  }
  0x19   : > { %1217 = vmatprep.mubr.msk.f32.mxu1 %vm327_vm0, %v1143_v10  ;;  %1241 = vmatprep.mubr.msk.f32.mxu0 %vm327_vm0, %v300_v11 }
  0x1b   : > { %1242 = vmatmul.mubr.msk.f32.vlgmr.msra.gmra.mrb[0].mxu0 %vm327_vm0, %v301_v13 }
  0x1c   : > { %1218 = vmatmul.mubr.msk.f32.gmra.mrb[4].mxu1 %vm327_vm0, %v1144_v12  ;;  %1244 = vmatprep.mubr.msk.f32.mxu0 %vm327_vm0, %v302_v14 }
  0x1d   : > { %1222 = vmatprep.mubr.msk.f32.mxu1 %vm327_vm0, %v1137_v3 }
  0x1f   : > { %1245 = vmatmul.mubr.msk.f32.gmra.mrb[4].mxu0 %vm327_vm0, %v303_v15 }
  0x20   : > { %1223 = vmatmul.mubr.msk.f32.vlgmr.msra.gmra.mrb[6].mxu1 %vm327_vm0, %v1138_v5  ;;  %1247 = vmatprep.mubr.msk.f32.mxu0 %vm327_vm0, %v304_v16 }
  0x21   : > { %1225 = vmatprep.mubr.msk.f32.mxu1 %vm327_vm0, %v1139_v4 }
  0x23   : > { %1248 = vmatmul.mubr.msk.f32.gmra.mrb[6].mxu0 %vm327_vm0, %v305_v17  ;;  %v1172_v17 = vld [vmem:[%s1471_s3] ss:$0 sm:$0xff] }
  0x24   : > { %1226 = vmatmul.mubr.msk.f32.gmra.mrb[8].mxu1 %vm327_vm0, %v1140_v6  ;;  %1250 = vmatprep.mubr.msk.f32.mxu0 %vm327_vm0, %v306_v18 }
  0x25   : > { %1228 = vmatprep.mubr.msk.f32.mxu1 %vm327_vm0, %v1141_v7 }
  0x27   : > { %1251 = vmatmul.mubr.msk.f32.gmra.mrb[8].mxu0 %vm327_vm0, %v307_v19 }
  0x28   : > { %1229 = vmatmul.mubr.msk.f32.gmra.mrb[10].mxu1 %vm327_vm0, %v1142_v9  ;;  %v847_v9 = vunpack.c.l.s4 %v1326_v8 }
  0x29   : > { %1231 = vmatprep.mubr.msk.f32.mxu1 %vm327_vm0, %v1143_v10  ;;  %v849_v10 = vlaneseq }
  0x2c   : > { %1232 = vmatmul.mubr.msk.f32.gmra.mrb[12].mxu1 %vm327_vm0, %v1144_v12 }
  0xe7   : > { %v1213_v20 = vpop.f32.mrb[0].mxu1 }
  0xe8   : > { %v428_v21 = vpop.f32.mrb[1].mxu1 }
  0xea   : > { %v631_v22 = vpop.f32.mrb[2].mxu0 }
  0xeb   : > { %v1216_v23 = vpop.f32.mrb[2].mxu1  ;;  %v1238_v24 = vpop.f32.mrb[3].mxu0 }
  0xec   : > { %v438_v25 = vpop.f32.mrb[3].mxu1 }
  0xee   : > { %v1243_v26 = vpop.f32.mrb[0].mxu0 }
  0xef   : > { %v1219_v27 = vpop.f32.mrb[4].mxu1  ;;  %v725_v28 = vpop.f32.mrb[1].mxu0 }
  0xf0   : > { %v448_v29 = vpop.f32.mrb[5].mxu1  ;;  %v764_v30 = vadd.f32 %v725_v28, %v631_v22 }
  0xf2   : > { %v1246_v32 = vpop.f32.mrb[4].mxu0  ;;  %v780_v33 = vrot.slane %v764_v30, 7 }
  0xf3   : > { %v1224_v31 = vpop.f32.mrb[6].mxu1  ;;  %v741_v34 = vadd.f32 %v1246_v32, %v1213_v20  ;;  %v735_v36 = vpop.f32.mrb[5].mxu0  ;;  %v848_v20 = vunpack.c.0.s8 %v847_v9 }
  0xf4   : > { %v524_v35 = vpop.f32.mrb[7].mxu1  ;;  %v736_v38 = vadd.f32 %v735_v36, %v428_v21  ;;  %788 = vrot.lane.b32.xlu0 %v780_v33, %s1325_s28  ;;  %v850_v21 = vshrl.u32 %v849_v10, 7 }
  0xf5   : > { %v765_v37 = vadd.f32 %v1243_v26, %v524_v35 }
  0xf6   : > { %v766_v40 = vadd.f32 %v1224_v31, %v736_v38  ;;  %v1249_v42 = vpop.f32.mrb[6].mxu0  ;;  %v851_v38 = vsub.s32 %v848_v20, %v850_v21 }
  0xf7   : > { %v781_v39 = vrot.slane %v765_v37, 7  ;;  %v1227_v41 = vpop.f32.mrb[8].mxu1  ;;  %v751_v43 = vadd.f32 %v1249_v42, %v1216_v23  ;;  %v745_v45 = vpop.f32.mrb[7].mxu0 }
  0xf8   : > { %v534_v44 = vpop.f32.mrb[9].mxu1  ;;  %v746_v47 = vadd.f32 %v745_v45, %v438_v25  ;;  %v782_v48 = vrot.slane %v766_v40, 7 }
  0xf9   : > { %v767_v46 = vadd.f32 %v741_v34, %v534_v44  ;;  %790 = vrot.lane.b32.xlu0 %v781_v39, %s1325_s28  ;;  %v1327_v34 = vmov 1934713408  }
  0xfa   : > { %v768_v49 = vadd.f32 %v1227_v41, %v746_v47  ;;  %v1252_v51 = vpop.f32.mrb[8].mxu0  ;;  %792 = vrot.lane.b32.xlu1 %v782_v48, %s1325_s28  ;;  %v911_v35 = vunpack.c.l.s4 %v1327_v34 }
  0xfb   : > { %v1230_v50 = vpop.f32.mrb[10].mxu1  ;;  %v761_v52 = vadd.f32 %v1252_v51, %v1219_v27  ;;  %v755_v54 = vpop.f32.mrb[9].mxu0  ;;  %v783_v55 = vrot.slane %v767_v46, 7 }
  0xfc   : > { %v544_v53 = vpop.f32.mrb[11].mxu1  ;;  %v756_v57 = vadd.f32 %v755_v54, %v448_v29  ;;  %v784_v58 = vrot.slane %v768_v49, 7  ;;  %v912_v45 = vunpack.c.0.s8 %v911_v35 }
  0xfd   : > { %v769_v56 = vadd.f32 %v751_v43, %v544_v53 }
  0xfe   : > { %v770_v59 = vadd.f32 %v1230_v50, %v756_v57  ;;  %796 = vrot.lane.b32.xlu0 %v784_v58, %s1325_s28  ;;  %794 = vrot.lane.b32.xlu1 %v783_v55, %s1325_s28 }
  0xff   : > { %v1233_v60 = vpop.f32.mrb[12].mxu1  ;;  %v785_v62 = vrot.slane %v769_v56, 7 }
 0x100   : > { %v554_v61 = vpop.f32.mrb[13].mxu1  ;;  %v786_v0 = vrot.slane %v770_v59, 7 }
 0x101   : > { %v771_v63 = vadd.f32 %v761_v52, %v554_v61 }
 0x102   : > { %800 = vrot.lane.b32.xlu0 %v786_v0, %s1325_s28  ;;  %798 = vrot.lane.b32.xlu1 %v785_v62, %s1325_s28 }
 0x103   : > { %v787_v1 = vrot.slane %v771_v63, 7 }
 0x106   : > { %802 = vrot.lane.b32.xlu1 %v787_v1, %s1325_s28 }
 0x166   : > { %v789_v2 = vpop.permute.xlu0 %788 }
 0x167   : > { %v813_v7 = vsel %vm812_vm2, 0.0, %v789_v2 }
 0x168   : > { %v821_v18 = vadd.f32 %v813_v7, %v764_v30 }
 0x16a   : > { %v836_v32 = vadd.f32 %v1172_v17, %v821_v18 }
 0x16b   : > { %v791_v3 = vpop.permute.xlu0 %790 }
 0x16c   : > { %v793_v4 = vpop.permute.xlu1 %792  ;;  %v814_v5 = vsel %vm812_vm2, 0.0, %v791_v3 }
 0x16d   : > { %v815_v6 = vsel %vm812_vm2, 0.0, %v793_v4  ;;  %v822_v13 = vadd.f32 %v814_v5, %v765_v37 }
 0x16e   : > { %v823_v14 = vadd.f32 %v815_v6, %v766_v40 }
 0x16f   : > { %v837_v25 = vadd.f32 %v1172_v17, %v822_v13 }
 0x170   : > { %v797_v11 = vpop.permute.xlu0 %796  ;;  %v795_v12 = vpop.permute.xlu1 %794  ;;  %v838_v26 = vadd.f32 %v1172_v17, %v823_v14 }
 0x171   : > { %v816_v15 = vsel %vm812_vm2, 0.0, %v795_v12  ;;  %v817_v19 = vsel %vm812_vm2, 0.0, %v797_v11 }
 0x172   : > { %v824_v16 = vadd.f32 %v816_v15, %v767_v46  ;;  %v825_v29 = vadd.f32 %v817_v19, %v768_v49  ;;  %v844_v39 = vcombine.low %v836_v32, %v838_v26  ;;  %v845_v50 = vcombine.high %v836_v32, %v838_v26 }
 0x174   : > { %v839_v22 = vadd.f32 %v1172_v17, %v824_v16  ;;  %v801_v23 = vpop.permute.xlu0 %800  ;;  %v799_v24 = vpop.permute.xlu1 %798  ;;  %v840_v41 = vadd.f32 %v1172_v17, %v825_v29  ;;  %v852_v51 = vrot.slane %v844_v39, %v851_v38  ;;  %v859_v62 = vrot.slane %v845_v50, %v851_v38 }
 0x175   : > { %v819_v27 = vsel %vm812_vm2, 0.0, %v801_v23  ;;  %v818_v28 = vsel %vm812_vm2, 0.0, %v799_v24 }
 0x176   : > { %v827_v31 = vadd.f32 %v819_v27, %v770_v59  ;;  %v860_v33 = vcombine.low %v837_v25, %v839_v22  ;;  %v826_v36 = vadd.f32 %v818_v28, %v769_v56  ;;  %v861_v43 = vcombine.high %v837_v25, %v839_v22 }
 0x177   : > { %v915_v56 = vsub.s32 %v912_v45, %v850_v21 }
 0x178   : > { %v842_v30 = vadd.f32 %v1172_v17, %v827_v31  ;;  %v803_v37 = vpop.permute.xlu1 %802  ;;  %v868_v44 = vrot.slane %v860_v33, %v851_v38  ;;  %v841_v48 = vadd.f32 %v1172_v17, %v826_v36  ;;  %v875_v54 = vrot.slane %v861_v43, %v851_v38 }
 0x179   : > { %v820_v40 = vsel %vm812_vm2, 0.0, %v803_v37 }
 0x17a   : > { %v828_v42 = vadd.f32 %v820_v40, %v771_v63  ;;  %v876_v46 = vcombine.low %v840_v41, %v842_v30  ;;  %v877_v47 = vcombine.high %v840_v41, %v842_v30  ;;  %v909_v55 = vcombine.high %v852_v51, %v868_v44 }
 0x17b   : > { %v908_v57 = vcombine.low %v852_v51, %v868_v44  ;;  %v924_v2 = vcombine.low %v859_v62, %v875_v54  ;;  %v925_v13 = vcombine.high %v859_v62, %v875_v54 }
 0x17c   : > { %v843_v49 = vadd.f32 %v1172_v17, %v828_v42  ;;  %v884_v58 = vrot.slane %v876_v46, %v851_v38  ;;  %v891_v59 = vrot.slane %v877_v47, %v851_v38  ;;  %v923_v3 = vrot.slane %v909_v55, %v915_v56 }
 0x17d   : > { %v916_v5 = vrot.slane %v908_v57, %v915_v56  ;;  %v932_v12 = vrot.slane %v924_v2, %v915_v56  ;;  %v939_v17 = vrot.slane %v925_v13, %v915_v56 }
 0x17e   : > { %v892_v52 = vcombine.low %v841_v48, %v843_v49  ;;  %v893_v53 = vcombine.high %v841_v48, %v843_v49 }
 0x180   : > { %v900_v60 = vrot.slane %v892_v52, %v851_v38  ;;  %v907_v61 = vrot.slane %v893_v53, %v851_v38 }
 0x182   : > { %v941_v63 = vcombine.high %v884_v58, %v900_v60  ;;  %v940_v0 = vcombine.low %v884_v58, %v900_v60  ;;  %v956_v1 = vcombine.low %v891_v59, %v907_v61  ;;  %v957_v10 = vcombine.high %v891_v59, %v907_v61 }
 0x184   : > { %v955_v4 = vrot.slane %v941_v63, %v915_v56  ;;  %v948_v6 = vrot.slane %v940_v0, %v915_v56  ;;  %v964_v9 = vrot.slane %v956_v1, %v915_v56  ;;  %v971_v16 = vrot.slane %v957_v10, %v915_v56 }
 0x186   : > { %v974_v7 = vcombine.low %v923_v3, %v955_v4  ;;  %v973_v8 = vcombine.high %v916_v5, %v948_v6  ;;  %v972_v11 = vcombine.low %v916_v5, %v948_v6  ;;  %v976_v14 = vcombine.low %v932_v12, %v964_v9 }
 0x187   : > { %v975_v15 = vcombine.high %v923_v3, %v955_v4  ;;  %v978_v18 = vcombine.low %v939_v17, %v971_v16  ;;  %v977_v19 = vcombine.high %v932_v12, %v964_v9  ;;  %v979_v20 = vcombine.high %v939_v17, %v971_v16 }
 0x188   : > { %985 = vrot.lane.b32.xlu1 %v974_v7, %s1328_s5  ;;  %981 = vrot.lane.b32.xlu0 %v973_v8, %s1329_s6 }
 0x18c   : > { %993 = vrot.lane.b32.xlu1 %v976_v14, %s1330_s7  ;;  %989 = vrot.lane.b32.xlu0 %v975_v15, %s1331_s8 }
 0x190   : > { %1001 = vrot.lane.b32.xlu1 %v978_v18, %s1332_s9  ;;  %997 = vrot.lane.b32.xlu0 %v977_v19, %s1333_s10 }
 0x194   : > { %1005 = vrot.lane.b32.xlu0 %v979_v20, %s1334_s11 }
 0x1fa   : > { %v986_v21 = vpop.permute.xlu1 %985  ;;  %v982_v22 = vpop.permute.xlu0 %981 }
 0x1fb   : > { %v1009_v23 = vsel %vm1008_vm3, %v972_v11, %v982_v22 }
 0x1fc   : > { %v1010_v26 = vsel %vm327_vm0, %v1009_v23, %v986_v21 }
 0x1fe   : > { %v994_v24 = vpop.permute.xlu1 %993  ;;  %v990_v25 = vpop.permute.xlu0 %989 }
 0x1ff   : > { %v1012_v27 = vsel %vm1011_vm4, %v1010_v26, %v990_v25 }
 0x200   : > { %v1014_v29 = vsel %vm1013_vm5, %v1012_v27, %v994_v24 }
 0x202   : > { %v998_v28 = vpop.permute.xlu0 %997  ;;  %v1002_v31 = vpop.permute.xlu1 %1001 }
 0x203   : > { %v1016_v32 = vsel %vm1015_vm6, %v1014_v29, %v998_v28 }
 0x204   : > { %v1018_v34 = vsel %vm1017_vm7, %v1016_v32, %v1002_v31 }
 0x206   : > { %v1006_v33 = vpop.permute.xlu0 %1005 }
 0x207   : > { %v1020_v35 = vsel %vm1019_vm8, %v1018_v34, %v1006_v33 }
 0x208   : > { %1022 = vst.msk [vmem:[%s299_s18] sm:$0xff] %vm1021_vm9, %v1020_v35 }
 0x209 PF: > { %s14_s17 = sadd.s32 1, %s1321_s17   ;;  %s1473_s15 = smov %s1317_s16 }
 0x20a   : > { %p11_p5 = scmp.ge.s32.totalorder %s14_s17, 4   ;;  %s1474_s16 = smov %s1476_s1 }
 0x20c   :  { %13 = sbr.rel (!%p11_p5) target bundleno = 2 (0x2), region = 72 }

</bundles_post_ra>
